<compile_context>
chip_gen: v7x
topology: tpu7x:2x2x1
jax: 0.10.0
libtpu: 0.0.40
codegen_flags: <defaults>
</compile_context>

<pallas_src>
import functools

import jax
import jax.numpy as jnp
import numpy as np
from jax.experimental import pallas as pl
from jax.experimental.pallas import tpu as pltpu


# ----------------------------------------------------------------------------
# Kernel 1: weight transform, all output channels in one batched MXU contraction
# ----------------------------------------------------------------------------
def _weight_transform_kernel(m_ref, w_ref, o_ref):
    # m_ref: (Cout, K, K)   with m_ref[c, j, k] = M[c, k, j]
    # w_ref: (Cout, K, Cin) with w_ref[c, k, i] = W[c, i, k]
    # o_ref: (Cout, K, Cin) : o[c, j, i] = sum_k M[c, k, j] * W[c, i, k] = W_new[c, i, j]
    # Single batched dot (canonical (b,m,k)x(b,k,n)), one full-tile store.
    o_ref[...] = jnp.einsum('cjk,cki->cji', m_ref[...], w_ref[...],
                            preferred_element_type=jnp.float32)


def weight_transform(weight, m):
    """W_new[o, i, t] = sum_k W[o, i, k] * M[o, k, t], returned in the conv
    kernel's (Cout, K, Cin) layout: out[o, t, i] = W_new[o, i, t]."""
    cout, cin, kh, kw = weight.shape
    k = kh * kw
    # Tiny layout plumbing (288 / 648 elements) stays in XLA for free.
    w_kt = jnp.transpose(weight.reshape(cout, cin, k), (0, 2, 1)).astype(jnp.float32)
    m_t = jnp.transpose(m.astype(jnp.float32), (0, 2, 1))
    return pl.pallas_call(
        _weight_transform_kernel,
        out_shape=jax.ShapeDtypeStruct((cout, k, cin), jnp.float32),
    )(m_t, w_kt)


# ----------------------------------------------------------------------------
# Kernel 2: fused (im2col-in-VMEM + single matmul) conv.  Output NCHW-flat.
# ----------------------------------------------------------------------------
def _conv_kernel(x_ref, w_ref, b_ref, o_ref, patch_ref, *, kh, kw, oh_blk, ow, cin):
    # x_ref:     (1, Hp, Wp, Cin)      bf16  padded NHWC activations (full image)
    # w_ref:     (Cout, K*Cin)         bf16  transformed weight, tap-major / cin-minor
    # b_ref:     (Cout, 1)             f32
    # o_ref:     (1, Cout, OH_BLK*OW)  lane-dense NCHW-flat output block
    # patch_ref: (OH_BLK, OW, K*Cin)   bf16  VMEM im2col scratch
    j = pl.program_id(1)
    row0 = j * oh_blk
    if oh_blk % 8 == 0:
        row0 = pl.multiple_of(row0, 8)
    l = oh_blk * ow

    # Build the im2col patch once in VMEM: lane block t*Cin:(t+1)*Cin holds the
    # activation window of kernel tap t = ky*kw + kx.  One row-band load per
    # ky; the kx shifts are static in-register slices of that band.
    for ky in range(kh):
        band = x_ref[0, pl.ds(row0 + ky, oh_blk), :, :]            # (OH_BLK, Wp, Cin)
        for kx in range(kw):
            t = ky * kw + kx
            patch_ref[:, :, t * cin:(t + 1) * cin] = band[:, kx:kx + ow, :]

    # Single MXU matmul per block: contraction depth K*Cin, bf16 operands,
    # f32 accumulation; replaces kh*kw tiny dots + VPU adds.
    patch = patch_ref[...].reshape(l, kh * kw * cin)                # (L, K*Cin)
    acc = jnp.einsum('ck,lk->cl', w_ref[...], patch,
                     preferred_element_type=jnp.float32)            # (Cout, L)
    o_ref[0] = (acc + b_ref[...]).astype(o_ref.dtype)


def _pick_oh_block(oh, ow, cout, max_lanes):
    """Largest divisor of OH whose block (Cout, OH_BLK*OW) is lane-dense
    (L % 128 == 0), fits the lane budget, and keeps the f32 accumulator
    comfortably inside the vreg file."""
    lane_budget = max(128, min(max_lanes, (96 * 1024) // (4 * cout)))
    best = None
    for d in range(1, oh + 1):
        if oh % d == 0 and (d * ow) % 128 == 0 and d * ow <= lane_budget:
            best = d
    if best is None:
        # TODO(synk): pad OW (or OH) to recover lane-dense stores instead of
        # falling back to the full-extent (possibly masked-store) block.
        best = oh
    return best


def conv_wrapper_forward(x, weight, bias, m, stride=(1, 1), padding=(0, 0), *,
                         max_lanes=2048, out_dtype=jnp.float32):
    """ConvWrapper.forward for a wrapped Conv2d (NCHW in / NCHW out)."""
    cout, cin, kh, kw = weight.shape
    k = kh * kw
    n, _, h, w = x.shape
    if tuple(stride) != (1, 1):
        # TODO(synk): stride > 1 needs validated strided-sublane slicing in
        # Mosaic; not wired up here (the wrapped demo layer is stride 1).
        raise NotImplementedError("Pallas ConvWrapper path supports stride=(1, 1) only.")
    ph, pw = padding
    oh = h + 2 * ph - kh + 1
    ow = w + 2 * pw - kw + 1
    if bias is None:
        bias = jnp.zeros((cout,), jnp.float32)

    # 1) Weight transform (one batched Pallas contraction over all channels);
    #    reshape/cast ONCE in the wrapper to the conv kernel's (Cout, K*Cin)
    #    bf16 layout so the kernel never re-casts or lane-slices the weight.
    w_t = weight_transform(weight, m)                               # (Cout, K, Cin) f32
    w_lhs = w_t.reshape(cout, k * cin).astype(jnp.bfloat16)

    # 2) Pad + NCHW->NHWC + bf16 cast of the activations in one cheap XLA pass
    #    (no HBM im2col: the kh*kw windows are built in VMEM inside the kernel).
    xp = jnp.pad(x, ((0, 0), (0, 0), (ph, ph), (pw, pw)))
    xp = jnp.transpose(xp, (0, 2, 3, 1)).astype(jnp.bfloat16)       # (N, Hp, Wp, Cin)
    hp, wp = h + 2 * ph, w + 2 * pw

    # 3) Fused conv kernel.
    oh_blk = _pick_oh_block(oh, ow, cout, max_lanes)
    l = oh_blk * ow
    grid = (n, oh // oh_blk)        # v7x: keep n*(oh//oh_blk) >= 2 so both TCs get work

    kernel = functools.partial(_conv_kernel, kh=kh, kw=kw,
                               oh_blk=oh_blk, ow=ow, cin=cin)

    out_itemsize = np.dtype(out_dtype).itemsize
    flops = 2 * n * oh * ow * cout * cin * k
    bytes_accessed = (n * hp * wp * cin * 2                          # x DMA'd once per image
                      + cout * k * cin * 2 + cout * 4
                      + n * cout * oh * ow * out_itemsize)

    # Explicit VMEM budget (v5e's default scoped limit is only 16 MiB): double
    # buffers for the pipelined operands + the im2col scratch + headroom.
    est = (2 * hp * wp * cin * 2 + 2 * cout * k * cin * 2 + 2 * cout * 4
           + 2 * cout * l * out_itemsize + l * k * cin * 2 + cout * l * 4)
    vmem_limit = int(min(100 * 2 ** 20, max(8 * 2 ** 20, 2 * est)))

    y_flat = pl.pallas_call(
        kernel,
        out_shape=jax.ShapeDtypeStruct((n, cout, oh * ow), out_dtype),
        grid=grid,
        in_specs=[
            # Full padded image per batch element; its block index is constant
            # across the fast (j) axis, so it is DMA'd once per image.
            # TODO(synk): for large images, halo-tile H with manual
            # make_async_copy (or single-buffer the x BlockSpec) so the x VMEM
            # footprint scales with OH_BLK, not H (v7x: 64 MiB VMEM).
            pl.BlockSpec((1, hp, wp, cin), lambda i, j: (i, 0, 0, 0)),
            pl.BlockSpec((cout, k * cin), lambda i, j: (0, 0)),
            pl.BlockSpec((cout, 1), lambda i, j: (0, 0)),
        ],
        out_specs=pl.BlockSpec((1, cout, l), lambda i, j: (i, 0, j)),
        scratch_shapes=[pltpu.VMEM((oh_blk, ow, k * cin), jnp.bfloat16)],
        compiler_params=pltpu.CompilerParams(
            dimension_semantics=("parallel", "parallel"),
            vmem_limit_bytes=vmem_limit),
        cost_estimate=pl.CostEstimate(flops=flops, transcendentals=0,
                                      bytes_accessed=bytes_accessed),
    )(xp, w_lhs, bias.reshape(cout, 1).astype(jnp.float32))

    return y_flat.reshape(n, cout, oh, ow)        # free reshape, no transpose pass
    # TODO(synk): Conv1d branch of the module (kh=1 case) not wired up here.


if __name__ == "__main__":
    # Conv2d(4 -> 8, kernel 3x3, stride 1, padding 1) on a 2x4x16x16 input.
    N, Cin, H, W = 2, 4, 16, 16
    Cout, kh, kw = 8, 3, 3
    K = kh * kw
    stride, padding = (1, 1), (1, 1)

    key = jax.random.PRNGKey(0)
    kx_, kw_, kb_, km_ = jax.random.split(key, 4)
    x = jax.random.normal(kx_, (N, Cin, H, W), dtype=jnp.float32)
    weight = jax.random.normal(kw_, (Cout, Cin, kh, kw), dtype=jnp.float32) * 0.1
    bias = jax.random.normal(kb_, (Cout,), dtype=jnp.float32) * 0.1
    # Synthetic "preprocess.matrix()": one (K, K) mixing matrix per output channel.
    M = (jnp.eye(K, dtype=jnp.float32)[None]
         + 0.05 * jax.random.normal(km_, (Cout, K, K), dtype=jnp.float32))

    # --- check the Pallas weight transform against the plain-JAX reference ---
    w_t = jax.block_until_ready(weight_transform(weight, M))        # (Cout, K, Cin)
    w_new = jnp.transpose(w_t, (0, 2, 1)).reshape(Cout, Cin, kh, kw)
    w_new_ref = jnp.einsum('oik,okj->oij', weight.reshape(Cout, Cin, K),
                           M).reshape(Cout, Cin, kh, kw)
    np.testing.assert_allclose(np.asarray(w_new), np.asarray(w_new_ref),
                               rtol=1e-5, atol=1e-5)

    # --- reference conv (f32) ---
    y_ref = jax.lax.conv_general_dilated(
        x, w_new_ref, window_strides=stride,
        padding=[(padding[0], padding[0]), (padding[1], padding[1])],
        dimension_numbers=("NCHW", "OIHW", "NCHW"),
    ) + bias.reshape(1, Cout, 1, 1)

    # Default config: full-image output block per image (L = 256), grid (2, 1).
    y = jax.block_until_ready(conv_wrapper_forward(x, weight, bias, M, stride, padding))
    np.testing.assert_allclose(np.asarray(y), np.asarray(y_ref), rtol=2e-2, atol=2e-2)

    # Also exercise the oh-tiled path (L = 128 per block, grid (2, 2)).
    y2 = jax.block_until_ready(conv_wrapper_forward(x, weight, bias, M, stride, padding,
                                                    max_lanes=128))
    np.testing.assert_allclose(np.asarray(y2), np.asarray(y_ref), rtol=2e-2, atol=2e-2)

    print("KERNEL_OK")
</pallas_src>

<mosaic_0001>
module attributes {stable_mosaic.version = 11 : i64} {
  func.func @_weight_transform_kernel(%arg0: memref<8x9x9xf32, #tpu.memory_space<vmem>>, %arg1: memref<8x9x4xf32, #tpu.memory_space<vmem>>, %arg2: memref<8x9x4xf32, #tpu.memory_space<vmem>>) attributes {dimension_semantics = [], scalar_prefetch = 0 : i64, scratch_operands = 0 : i64, tpu.core_type = #tpu.core_type<tc>} {
    %c0 = arith.constant 0 : index
    %c0_0 = arith.constant 0 : index
    %c0_1 = arith.constant 0 : index
    %0 = vector.load %arg0[%c0, %c0_0, %c0_1] : memref<8x9x9xf32, #tpu.memory_space<vmem>>, vector<8x9x9xf32>
    %c0_2 = arith.constant 0 : index
    %c0_3 = arith.constant 0 : index
    %c0_4 = arith.constant 0 : index
    %1 = vector.load %arg1[%c0_2, %c0_3, %c0_4] : memref<8x9x4xf32, #tpu.memory_space<vmem>>, vector<8x9x4xf32>
    "tpu.trace_start"() <{level = 10 : i32, message = "cjk,cki->cji"}> : () -> ()
    %cst = arith.constant dense<0.000000e+00> : vector<8x9x4xf32>
    %2 = tpu.matmul %0, %1, %cst {dimension_numbers = #tpu.dot_dimension_numbers<[2], [1], [1], [2], [0, 0, 0, 1, 1, 2], [0], [0]>} : vector<8x9x9xf32>, vector<8x9x4xf32>, vector<8x9x4xf32> -> vector<8x9x4xf32>
    "tpu.trace_stop"() : () -> ()
    %c0_5 = arith.constant 0 : index
    %c0_6 = arith.constant 0 : index
    %c0_7 = arith.constant 0 : index
    %3 = vector.load %arg2[%c0_5, %c0_6, %c0_7] : memref<8x9x4xf32, #tpu.memory_space<vmem>>, vector<8x9x4xf32>
    tpu.vector_store %arg2[%c0_5, %c0_6, %c0_7], %2 {strides = array<i32>} : memref<8x9x4xf32, #tpu.memory_space<vmem>>, vector<8x9x4xf32>,
    return
  }
}

</mosaic_0001>

<bundles_post_ra>
// kernel: tpu_custom_call.1
= control target key start
LH: loop header
LB: loop body
LE: loop exit
PB: predicated region body
PF: predicated region fallthrough
CT: control target
= control target key end

     0   :  { %vm50_vm0 = vcmask 1040384   ;;  %vm43_vm1 = vcmask 72704   ;;  %vm900_vm2 = vmmov 1   ;;  %vm719_vm4 = vcmask 24576   ;;  %s1128_s1 = inlined_call_operand.vmem [shape: f32[8,9,4], index: 1, kind: input, shape index: {}]   ;;  %s1129_s0 = inlined_call_operand.vmem [shape: f32[8,9,9], index: 0, kind: input, shape index: {}]   ;;  %s1130_s2 = inlined_call_operand.vmem [shape: f32[8,9,4], index: 2, kind: output, shape index: {}]  }
   0x1   :  { %v27_v0 = vld [vmem:[%s1128_s1] sm:$0xff]  ;;  %v28_v1 = vld [vmem:[%s1128_s1 + $0x8] sm:$0x1]  ;;  %vm922_vm3 = vmpackc.low %vm50_vm0, %vm900_vm2  ;;  %vm717_vm5 = vcmask 31744  }
   0x2   :  { %v851_v3 = vpack.c.bf16 %v28_v1, %v27_v0  ;;  %v29_v4 = vld [vmem:[%s1128_s1 + $0x10] sm:$0xff]  ;;  %v30_v5 = vld [vmem:[%s1128_s1 + $0x18] sm:$0x1]  ;;  %v11_v6 = vld [vmem:[%s1129_s0] sm:$0xff] }
   0x3   :  { %v857_v7 = vpack.c.bf16 %v30_v5, %v29_v4  ;;  %799 = vmatprep.mubr.msk.f32.mxu0 %vm43_vm1, %v11_v6  ;;  %v13_v8 = vld [vmem:[%s1129_s0 + $0x10] sm:$0xff]  ;;  %v31_v9 = vld [vmem:[%s1128_s1 + $0x20] sm:$0xff]  ;;  %v32_v10 = vld [vmem:[%s1128_s1 + $0x28] sm:$0x1] }
   0x4   :  { %853 = vmatprep.subr.msk.bf16.mxu0 %vm922_vm3, %v851_v3  ;;  %806 = vmatprep.mubr.msk.f32.mxu1 %vm43_vm1, %v13_v8  ;;  %v33_v11 = vld [vmem:[%s1128_s1 + $0x30] sm:$0xff]  ;;  %v12_v12 = vld [vmem:[%s1129_s0 + $0x8] sm:$0x1]  ;;  %v863_v13 = vpack.c.bf16 %v32_v10, %v31_v9  ;;  %v34_v14 = vld [vmem:[%s1128_s1 + $0x38] sm:$0x1] }
   0x5   :  { %859 = vmatprep.subr.msk.bf16.mxu1 %vm922_vm3, %v857_v7  ;;  %856 = vmatpush3.bf16.msk.msra.mxu0 %vm922_vm3, %v851_v3  ;;  %v14_v15 = vld [vmem:[%s1129_s0 + $0x18] sm:$0x1]  ;;  %v869_v16 = vpack.c.bf16 %v34_v14, %v33_v11  ;;  %v15_v17 = vld [vmem:[%s1129_s0 + $0x20] sm:$0xff]  ;;  %v36_v19 = vld [vmem:[%s1128_s1 + $0x48] sm:$0x1] }
   0x6   :  { %862 = vmatpush3.bf16.msk.msra.mxu1 %vm922_vm3, %v857_v7  ;;  %v35_v18 = vld [vmem:[%s1128_s1 + $0x40] sm:$0xff]  ;;  %865 = vmatprep.subr.msk.bf16.mxu0 %vm922_vm3, %v863_v13  ;;  %v37_v20 = vld [vmem:[%s1128_s1 + $0x50] sm:$0xff]  ;;  %v38_v21 = vld [vmem:[%s1128_s1 + $0x58] sm:$0x1] }
   0x7   :  { %871 = vmatprep.subr.msk.bf16.mxu1 %vm922_vm3, %v869_v16  ;;  %v17_v22 = vld [vmem:[%s1129_s0 + $0x30] sm:$0xff]  ;;  %v875_v23 = vpack.c.bf16 %v36_v19, %v35_v18  ;;  %v881_v24 = vpack.c.bf16 %v38_v21, %v37_v20  ;;  %v16_v25 = vld [vmem:[%s1129_s0 + $0x28] sm:$0x1]  ;;  %v39_v26 = vld [vmem:[%s1128_s1 + $0x60] sm:$0xff] }
   0x8   :  { %800 = vmatmul.mubr.msk.f32.vlgmr.msra.gmra.mrb[0].mxu0 %vm43_vm1, %v12_v12  ;;  %v40_v27 = vld [vmem:[%s1128_s1 + $0x68] sm:$0x1]  ;;  %v18_v28 = vld [vmem:[%s1129_s0 + $0x38] sm:$0x1]  ;;  %v41_v29 = vld [vmem:[%s1128_s1 + $0x70] sm:$0xff] }
   0x9   :  { %807 = vmatmul.mubr.msk.f32.vlgmr.msra.gmra.mrb[0].mxu1 %vm43_vm1, %v14_v15  ;;  %868 = vmatpush3.bf16.msk.msra.mxu0 %vm922_vm3, %v863_v13  ;;  %v42_v30 = vld [vmem:[%s1128_s1 + $0x78] sm:$0x1]  ;;  %v19_v31 = vld [vmem:[%s1129_s0 + $0x40] sm:$0xff]  ;;  %v887_v32 = vpack.c.bf16 %v40_v27, %v39_v26  ;;  %v21_v33 = vld [vmem:[%s1129_s0 + $0x50] sm:$0xff] }
   0xa   :  { %874 = vmatpush3.bf16.msk.msra.mxu1 %vm922_vm3, %v869_v16  ;;  %813 = vmatprep.mubr.msk.f32.mxu0 %vm43_vm1, %v15_v17  ;;  %v893_v34 = vpack.c.bf16 %v42_v30, %v41_v29  ;;  %v20_v35 = vld [vmem:[%s1129_s0 + $0x48] sm:$0x1]  ;;  %v22_v36 = vld [vmem:[%s1129_s0 + $0x58] sm:$0x1]  ;;  %v23_v37 = vld [vmem:[%s1129_s0 + $0x60] sm:$0xff] }
   0xb   :  { %820 = vmatprep.mubr.msk.f32.mxu1 %vm43_vm1, %v17_v22  ;;  %877 = vmatprep.subr.msk.bf16.mxu0 %vm922_vm3, %v875_v23  ;;  %v25_v38 = vld [vmem:[%s1129_s0 + $0x70] sm:$0xff]  ;;  %v24_v39 = vld [vmem:[%s1129_s0 + $0x68] sm:$0x1]  ;;  %v26_v40 = vld [vmem:[%s1129_s0 + $0x78] sm:$0x1] }
   0xc   :  { %814 = vmatmul.mubr.msk.f32.vlgmr.msra.gmra.mrb[2].mxu0 %vm43_vm1, %v16_v25  ;;  %883 = vmatprep.subr.msk.bf16.mxu1 %vm922_vm3, %v881_v24 }
   0xd   :  { %821 = vmatmul.mubr.msk.f32.vlgmr.msra.gmra.mrb[2].mxu1 %vm43_vm1, %v18_v28  ;;  %880 = vmatpush3.bf16.msk.msra.mxu0 %vm922_vm3, %v875_v23 }
   0xe   :  { %886 = vmatpush3.bf16.msk.msra.mxu1 %vm922_vm3, %v881_v24  ;;  %827 = vmatprep.mubr.msk.f32.mxu0 %vm43_vm1, %v19_v31 }
   0xf   :  { %834 = vmatprep.mubr.msk.f32.mxu1 %vm43_vm1, %v21_v33  ;;  %889 = vmatprep.subr.msk.bf16.mxu0 %vm922_vm3, %v887_v32 }
  0x10   :  { %828 = vmatmul.mubr.msk.f32.vlgmr.msra.gmra.mrb[4].mxu0 %vm43_vm1, %v20_v35  ;;  %895 = vmatprep.subr.msk.bf16.mxu1 %vm922_vm3, %v893_v34 }
  0x11   :  { %835 = vmatmul.mubr.msk.f32.vlgmr.msra.gmra.mrb[4].mxu1 %vm43_vm1, %v22_v36  ;;  %892 = vmatpush3.bf16.msk.msra.mxu0 %vm922_vm3, %v887_v32 }
  0x12   :  { %898 = vmatpush3.bf16.msk.msra.mxu1 %vm922_vm3, %v893_v34  ;;  %841 = vmatprep.mubr.msk.f32.mxu0 %vm43_vm1, %v23_v37 }
  0x13   :  { %848 = vmatprep.mubr.msk.f32.mxu1 %vm43_vm1, %v25_v38 }
  0x14   :  { %842 = vmatmul.mubr.msk.f32.vlgmr.msra.gmra.mrb[6].mxu0 %vm43_vm1, %v24_v39 }
  0x15   :  { %849 = vmatmul.mubr.msk.f32.vlgmr.msra.gmra.mrb[6].mxu1 %vm43_vm1, %v26_v40 }
  0xdb   :  { %v801_v41 = vpop.f32.mrb[0].mxu0 }
  0xdc   :  { %720 = vst.msk [vmem:[%s1130_s2 + $0x8] sm:$0x1] %vm719_vm4, %v801_v41  ;;  %v808_v42 = vpop.f32.mrb[0].mxu1  ;;  %v120_v43 = vpop.f32.mrb[1].mxu0 }
  0xdd   :  { %722 = vst.msk [vmem:[%s1130_s2 + $0x18] sm:$0x1] %vm719_vm4, %v808_v42  ;;  %v204_v44 = vpop.f32.mrb[1].mxu1 }
  0xde   :  { %718 = vst.msk [vmem:[%s1130_s2] sm:$0xff] %vm717_vm5, %v120_v43  ;;  %721 = vst.msk [vmem:[%s1130_s2 + $0x10] sm:$0xff] %vm717_vm5, %v204_v44 }
  0xdf   :  { %v815_v45 = vpop.f32.mrb[2].mxu0 }
  0xe0   :  { %724 = vst.msk [vmem:[%s1130_s2 + $0x28] sm:$0x1] %vm719_vm4, %v815_v45  ;;  %v822_v46 = vpop.f32.mrb[2].mxu1  ;;  %v288_v47 = vpop.f32.mrb[3].mxu0 }
  0xe1   :  { %726 = vst.msk [vmem:[%s1130_s2 + $0x38] sm:$0x1] %vm719_vm4, %v822_v46  ;;  %v372_v48 = vpop.f32.mrb[3].mxu1 }
  0xe2   :  { %723 = vst.msk [vmem:[%s1130_s2 + $0x20] sm:$0xff] %vm717_vm5, %v288_v47  ;;  %725 = vst.msk [vmem:[%s1130_s2 + $0x30] sm:$0xff] %vm717_vm5, %v372_v48 }
  0xe3   :  { %v829_v49 = vpop.f32.mrb[4].mxu0 }
  0xe4   :  { %728 = vst.msk [vmem:[%s1130_s2 + $0x48] sm:$0x1] %vm719_vm4, %v829_v49  ;;  %v836_v50 = vpop.f32.mrb[4].mxu1  ;;  %v456_v51 = vpop.f32.mrb[5].mxu0 }
  0xe5   :  { %730 = vst.msk [vmem:[%s1130_s2 + $0x58] sm:$0x1] %vm719_vm4, %v836_v50  ;;  %v540_v52 = vpop.f32.mrb[5].mxu1 }
  0xe6   :  { %727 = vst.msk [vmem:[%s1130_s2 + $0x40] sm:$0xff] %vm717_vm5, %v456_v51  ;;  %729 = vst.msk [vmem:[%s1130_s2 + $0x50] sm:$0xff] %vm717_vm5, %v540_v52 }
  0xe7   :  { %v843_v53 = vpop.f32.mrb[6].mxu0 }
  0xe8   :  { %732 = vst.msk [vmem:[%s1130_s2 + $0x68] sm:$0x1] %vm719_vm4, %v843_v53  ;;  %v850_v54 = vpop.f32.mrb[6].mxu1  ;;  %v624_v55 = vpop.f32.mrb[7].mxu0 }
  0xe9   :  { %734 = vst.msk [vmem:[%s1130_s2 + $0x78] sm:$0x1] %vm719_vm4, %v850_v54  ;;  %v708_v56 = vpop.f32.mrb[7].mxu1 }
  0xea   :  { %731 = vst.msk [vmem:[%s1130_s2 + $0x60] sm:$0xff] %vm717_vm5, %v624_v55  ;;  %733 = vst.msk [vmem:[%s1130_s2 + $0x70] sm:$0xff] %vm717_vm5, %v708_v56 }

</bundles_post_ra>
